<compile_context>
chip_gen: v7x
topology: tpu7x:2x2x1
jax: 0.10.0
libtpu: 0.0.40
codegen_flags: <defaults>
</compile_context>

<pallas_src>
import jax
import jax.numpy as jnp
from jax import lax
from jax.experimental import pallas as pl
from jax.experimental.pallas import tpu as pltpu

_LANE_TILE = 256  # multiple of 128; divides H*W for the shapes used here


# ----------------------------------------------------------------------------- utils
def _mish(y):
    # numerically stable softplus, then x * tanh(softplus(x))
    sp = jnp.maximum(y, 0.0) + jnp.log1p(jnp.exp(-jnp.abs(y)))
    return y * jnp.tanh(sp)


def _flatten_act(x_nchw):
    # (N, C, H, W) -> lane-dense (C, N*H*W)
    n, c, h, w = x_nchw.shape
    return x_nchw.transpose(1, 0, 2, 3).reshape(c, n * h * w)


def _unflatten_act(x_cp, n, h, w):
    c = x_cp.shape[0]
    return x_cp.reshape(c, n, h, w).transpose(1, 0, 2, 3)


def _fold_bn(gamma, beta, mean, var, eps=1e-5):
    scale = gamma / jnp.sqrt(var + eps)
    bias = beta - mean * scale
    return scale.reshape(-1, 1), bias.reshape(-1, 1)


def _im2col3x3(x_nchw):
    # (N, C, H, W) -> (9*C, N*H*W); column channel order is (dy, dx, c_in)
    n, c, h, w = x_nchw.shape
    xp = jnp.pad(x_nchw, ((0, 0), (0, 0), (1, 1), (1, 1)))
    cols = [xp[:, :, dy:dy + h, dx:dx + w] for dy in range(3) for dx in range(3)]
    return _flatten_act(jnp.concatenate(cols, axis=1))


# ----------------------------------------------------------------------------- kernels
def _conv_bn_mish_kernel(w_ref, x_ref, s_ref, b_ref, o_ref):
    y = jnp.dot(w_ref[...], x_ref[...], preferred_element_type=jnp.float32)
    y = s_ref[...] * y + b_ref[...]
    o_ref[...] = _mish(y).astype(o_ref.dtype)


def _conv_bn_mish_add_kernel(w_ref, x_ref, s_ref, b_ref, r_ref, o_ref):
    y = jnp.dot(w_ref[...], x_ref[...], preferred_element_type=jnp.float32)
    y = s_ref[...] * y + b_ref[...]
    o_ref[...] = (r_ref[...] + _mish(y)).astype(o_ref.dtype)


def _concat_conv_bn_mish_kernel(wa_ref, a_ref, wb_ref, b_ref, s_ref, bias_ref, o_ref):
    y = jnp.dot(wa_ref[...], a_ref[...], preferred_element_type=jnp.float32)
    y = y + jnp.dot(wb_ref[...], b_ref[...], preferred_element_type=jnp.float32)
    y = s_ref[...] * y + bias_ref[...]
    o_ref[...] = _mish(y).astype(o_ref.dtype)


# ----------------------------------------------------------------------------- pallas wrappers
def _lane_tiling(p):
    tp = _LANE_TILE if p % _LANE_TILE == 0 else p
    return tp, (p // tp,)


def _pallas_gemm_bn_mish(w, x, scale, bias, residual=None):
    """out = [residual +] mish(scale * (w @ x) + bias); x is (C_k, P) lane-dense."""
    c_out, c_k = w.shape
    p = x.shape[1]
    tp, grid = _lane_tiling(p)

    w_spec = pl.BlockSpec((c_out, c_k), lambda i: (0, 0))
    x_spec = pl.BlockSpec((c_k, tp), lambda i: (0, i))
    v_spec = pl.BlockSpec((c_out, 1), lambda i: (0, 0))
    a_spec = pl.BlockSpec((c_out, tp), lambda i: (0, i))

    extra = c_out * p if residual is not None else 0
    cost = pl.CostEstimate(
        flops=2 * c_out * c_k * p + extra,
        transcendentals=3 * c_out * p,
        bytes_accessed=4 * (c_out * c_k + c_k * p + 2 * c_out + c_out * p + extra),
    )
    cparams = pltpu.CompilerParams(dimension_semantics=("parallel",))
    out_shape = jax.ShapeDtypeStruct((c_out, p), x.dtype)

    if residual is None:
        return pl.pallas_call(
            _conv_bn_mish_kernel,
            out_shape=out_shape,
            grid=grid,
            in_specs=[w_spec, x_spec, v_spec, v_spec],
            out_specs=a_spec,
            compiler_params=cparams,
            cost_estimate=cost,
        )(w, x, scale, bias)

    return pl.pallas_call(
        _conv_bn_mish_add_kernel,
        out_shape=out_shape,
        grid=grid,
        in_specs=[w_spec, x_spec, v_spec, v_spec, a_spec],
        out_specs=a_spec,
        compiler_params=cparams,
        cost_estimate=cost,
    )(w, x, scale, bias, residual)


def _pallas_concat_gemm_bn_mish(wa, a, wb, b, scale, bias):
    """cv3 fused with the channel concat: mish(scale*(wa@a + wb@b) + bias)."""
    c_out, ca = wa.shape
    cb = wb.shape[1]
    p = a.shape[1]
    tp, grid = _lane_tiling(p)

    wa_spec = pl.BlockSpec((c_out, ca), lambda i: (0, 0))
    wb_spec = pl.BlockSpec((c_out, cb), lambda i: (0, 0))
    a_spec = pl.BlockSpec((ca, tp), lambda i: (0, i))
    b_spec = pl.BlockSpec((cb, tp), lambda i: (0, i))
    v_spec = pl.BlockSpec((c_out, 1), lambda i: (0, 0))
    o_spec = pl.BlockSpec((c_out, tp), lambda i: (0, i))

    cost = pl.CostEstimate(
        flops=2 * c_out * (ca + cb) * p,
        transcendentals=3 * c_out * p,
        bytes_accessed=4 * (c_out * (ca + cb) + (ca + cb) * p + 2 * c_out + c_out * p),
    )
    return pl.pallas_call(
        _concat_conv_bn_mish_kernel,
        out_shape=jax.ShapeDtypeStruct((c_out, p), a.dtype),
        grid=grid,
        in_specs=[wa_spec, a_spec, wb_spec, b_spec, v_spec, v_spec],
        out_specs=o_spec,
        compiler_params=pltpu.CompilerParams(dimension_semantics=("parallel",)),
        cost_estimate=cost,
    )(wa, a, wb, b, scale, bias)


# ----------------------------------------------------------------------------- C3 forward (Pallas)
def c3_forward_pallas(x, params, n=1, shortcut=True):
    N, _, H, W = x.shape
    xf = _flatten_act(x)

    def run_1x1(p, act_in, residual=None):
        w = p["w"].reshape(p["w"].shape[0], p["w"].shape[1])
        s, b = _fold_bn(p["gamma"], p["beta"], p["mean"], p["var"])
        return _pallas_gemm_bn_mish(w, act_in, s, b, residual)

    y1 = run_1x1(params["cv1"], xf)
    y2 = run_1x1(params["cv2"], xf)

    m = y1
    for i in range(n):
        t = run_1x1(params[f"m{i}_cv1"], m)
        p2 = params[f"m{i}_cv2"]
        col = _im2col3x3(_unflatten_act(t, N, H, W))            # (9*c_, N*H*W)
        w9 = p2["w"].transpose(0, 2, 3, 1).reshape(p2["w"].shape[0], -1)
        s, b = _fold_bn(p2["gamma"], p2["beta"], p2["mean"], p2["var"])
        m = _pallas_gemm_bn_mish(w9, col, s, b, residual=(m if shortcut else None))

    p3 = params["cv3"]
    c_ = m.shape[0]
    w3 = p3["w"].reshape(p3["w"].shape[0], p3["w"].shape[1])
    s3, b3 = _fold_bn(p3["gamma"], p3["beta"], p3["mean"], p3["var"])
    outf = _pallas_concat_gemm_bn_mish(w3[:, :c_], m, w3[:, c_:], y2, s3, b3)
    return _unflatten_act(outf, N, H, W)


# ----------------------------------------------------------------------------- pure-JAX reference
def _conv_bn_mish_ref(x, p, k):
    pad = k // 2
    y = lax.conv_general_dilated(
        x, p["w"], (1, 1), [(pad, pad), (pad, pad)],
        dimension_numbers=("NCHW", "OIHW", "NCHW"))
    g = p["gamma"].reshape(1, -1, 1, 1)
    bt = p["beta"].reshape(1, -1, 1, 1)
    mu = p["mean"].reshape(1, -1, 1, 1)
    vr = p["var"].reshape(1, -1, 1, 1)
    y = g * (y - mu) / jnp.sqrt(vr + 1e-5) + bt
    return _mish(y)


def c3_forward_ref(x, params, n=1, shortcut=True):
    y1 = _conv_bn_mish_ref(x, params["cv1"], 1)
    y2 = _conv_bn_mish_ref(x, params["cv2"], 1)
    m = y1
    for i in range(n):
        t = _conv_bn_mish_ref(m, params[f"m{i}_cv1"], 1)
        t = _conv_bn_mish_ref(t, params[f"m{i}_cv2"], 3)
        m = m + t if shortcut else t
    cat = jnp.concatenate([m, y2], axis=1)
    return _conv_bn_mish_ref(cat, params["cv3"], 1)


# ----------------------------------------------------------------------------- main
if __name__ == "__main__":
    key = jax.random.PRNGKey(0)
    keys = iter(jax.random.split(key, 64))

    N, c1, c2, H, W, n = 2, 16, 16, 16, 16, 1
    shortcut = True
    c_ = int(c2 * 0.5)

    def conv_params(c_in, c_out, k):
        return {
            "w": jax.random.normal(next(keys), (c_out, c_in, k, k), jnp.float32) * 0.1,
            "gamma": jax.random.uniform(next(keys), (c_out,), jnp.float32, 0.5, 1.5),
            "beta": jax.random.normal(next(keys), (c_out,), jnp.float32) * 0.1,
            "mean": jax.random.normal(next(keys), (c_out,), jnp.float32) * 0.1,
            "var": jax.random.uniform(next(keys), (c_out,), jnp.float32, 0.5, 1.5),
        }

    params = {
        "cv1": conv_params(c1, c_, 1),
        "cv2": conv_params(c1, c_, 1),
        "cv3": conv_params(2 * c_, c2, 1),
    }
    for i in range(n):
        params[f"m{i}_cv1"] = conv_params(c_, c_, 1)
        params[f"m{i}_cv2"] = conv_params(c_, c_, 3)

    x = jax.random.normal(next(keys), (N, c1, H, W), jnp.float32)

    out = c3_forward_pallas(x, params, n=n, shortcut=shortcut)
    out = jax.block_until_ready(out)

    ref = c3_forward_ref(x, params, n=n, shortcut=shortcut)
    assert out.shape == ref.shape, (out.shape, ref.shape)
    assert jnp.allclose(out, ref, atol=5e-3, rtol=5e-3), float(jnp.max(jnp.abs(out - ref)))

    print("KERNEL_OK")
</pallas_src>

<mosaic_0001>
module attributes {stable_mosaic.version = 11 : i64} {
  func.func @_conv_bn_mish_kernel(%arg0: i32, %arg1: memref<8x16xf32, #tpu.memory_space<vmem>>, %arg2: memref<16x256xf32, #tpu.memory_space<vmem>>, %arg3: memref<8x1xf32, #tpu.memory_space<vmem>>, %arg4: memref<8x1xf32, #tpu.memory_space<vmem>>, %arg5: memref<8x256xf32, #tpu.memory_space<vmem>>) attributes {dimension_semantics = [#tpu.dimension_semantics<parallel>], iteration_bounds = array<i64: 2>, scalar_prefetch = 0 : i64, scratch_operands = 0 : i64, tpu.core_type = #tpu.core_type<tc>, window_params = [{pipeline_mode = #tpu.pipeline_mode<synchronous>, transform_indices = @transform_0, window_bounds = array<i64: 8, 16>}, {transform_indices = @transform_1, window_bounds = array<i64: 16, 256>}, {pipeline_mode = #tpu.pipeline_mode<synchronous>, transform_indices = @transform_2, window_bounds = array<i64: 8, 1>}, {pipeline_mode = #tpu.pipeline_mode<synchronous>, transform_indices = @transform_3, window_bounds = array<i64: 8, 1>}, {transform_indices = @transform_4, window_bounds = array<i64: 8, 256>}]} {
    %c0 = arith.constant 0 : index
    %c0_0 = arith.constant 0 : index
    %0 = vector.load %arg1[%c0, %c0_0] : memref<8x16xf32, #tpu.memory_space<vmem>>, vector<8x16xf32>
    %c0_1 = arith.constant 0 : index
    %c0_2 = arith.constant 0 : index
    %1 = vector.load %arg2[%c0_1, %c0_2] : memref<16x256xf32, #tpu.memory_space<vmem>>, vector<16x256xf32>
    %cst = arith.constant dense<0.000000e+00> : vector<8x256xf32>
    %2 = tpu.matmul %0, %1, %cst {dimension_numbers = #tpu.dot_dimension_numbers<[1], [0], [0], [1], [0, 0, 1, 1], [], []>} : vector<8x16xf32>, vector<16x256xf32>, vector<8x256xf32> -> vector<8x256xf32>
    %c0_3 = arith.constant 0 : index
    %c0_4 = arith.constant 0 : index
    %3 = vector.load %arg3[%c0_3, %c0_4] : memref<8x1xf32, #tpu.memory_space<vmem>>, vector<8x1xf32>
    %4 = vector.broadcast %3 : vector<8x1xf32> to vector<8x256xf32>
    %5 = arith.mulf %4, %2 : vector<8x256xf32>
    %c0_5 = arith.constant 0 : index
    %c0_6 = arith.constant 0 : index
    %6 = vector.load %arg4[%c0_5, %c0_6] : memref<8x1xf32, #tpu.memory_space<vmem>>, vector<8x1xf32>
    %7 = vector.broadcast %6 : vector<8x1xf32> to vector<8x256xf32>
    %8 = arith.addf %5, %7 : vector<8x256xf32>
    %cst_7 = arith.constant 0.000000e+00 : f32
    %9 = vector.broadcast %cst_7 : f32 to vector<8x256xf32>
    %10 = arith.maximumf %8, %9 : vector<8x256xf32>
    %11 = math.absf %8 : vector<8x256xf32>
    %cst_8 = arith.constant 0.000000e+00 : f32
    %12 = vector.broadcast %cst_8 : f32 to vector<8x256xf32>
    %13 = arith.subf %12, %11 : vector<8x256xf32>
    %14 = math.exp %13 : vector<8x256xf32>
    %15 = math.log1p %14 : vector<8x256xf32>
    %16 = arith.addf %10, %15 : vector<8x256xf32>
    %17 = math.tanh %16 : vector<8x256xf32>
    %18 = arith.mulf %8, %17 : vector<8x256xf32>
    %c0_9 = arith.constant 0 : index
    %c0_10 = arith.constant 0 : index
    %19 = vector.load %arg5[%c0_9, %c0_10] : memref<8x256xf32, #tpu.memory_space<vmem>>, vector<8x256xf32>
    tpu.vector_store %arg5[%c0_9, %c0_10], %18 {strides = array<i32>} : memref<8x256xf32, #tpu.memory_space<vmem>>, vector<8x256xf32>,
    return
  }
  func.func @transform_0(%arg0: i32) -> (i32, i32) {
    %c0_i32 = arith.constant 0 : i32
    %c0_i32_0 = arith.constant 0 : i32
    %c0_i32_1 = arith.constant 0 : i32
    return %c0_i32, %c0_i32_0 : i32, i32
  }
  func.func @transform_1(%arg0: i32) -> (i32, i32) {
    %c0_i32 = arith.constant 0 : i32
    %c0_i32_0 = arith.constant 0 : i32
    return %c0_i32, %arg0 : i32, i32
  }
  func.func @transform_2(%arg0: i32) -> (i32, i32) {
    %c0_i32 = arith.constant 0 : i32
    %c0_i32_0 = arith.constant 0 : i32
    %c0_i32_1 = arith.constant 0 : i32
    return %c0_i32, %c0_i32_0 : i32, i32
  }
  func.func @transform_3(%arg0: i32) -> (i32, i32) {
    %c0_i32 = arith.constant 0 : i32
    %c0_i32_0 = arith.constant 0 : i32
    %c0_i32_1 = arith.constant 0 : i32
    return %c0_i32, %c0_i32_0 : i32, i32
  }
  func.func @transform_4(%arg0: i32) -> (i32, i32) {
    %c0_i32 = arith.constant 0 : i32
    %c0_i32_0 = arith.constant 0 : i32
    return %c0_i32, %arg0 : i32, i32
  }
}

</mosaic_0001>

<bundles_post_ra>
// kernel: tpu_custom_call.1
= control target key start
LH: loop header
LB: loop body
LE: loop exit
PB: predicated region body
PF: predicated region fallthrough
CT: control target
= control target key end

     0   :  { %9 = vsyncpa [#allocation3], 0  ;;  %s822_s0 = inlined_call_operand.vmem [shape: f32[8,16], index: 0, kind: input, shape index: {}]   ;;  %s823_s1 = inlined_call_operand.hbm [shape: f32[16,512], index: 1, kind: input, shape index: {}]   ;;  %s824_s2 = inlined_call_operand.vmem [shape: f32[8,1], index: 2, kind: input, shape index: {}]   ;;  %s825_s3 = inlined_call_operand.vmem [shape: f32[8,1], index: 3, kind: input, shape index: {}]   ;;  %s826_s4 = inlined_call_operand.hbm [shape: f32[8,512], index: 4, kind: output, shape index: {}]  }
   0x1   :  { %11 = vsyncpa [#allocation3 + $0x1], 0 }
   0x2   :  { %12 = vsyncpa [#allocation4], 0 }
   0x3   :  { %14 = vsyncpa [#allocation4 + $0x1], 0  ;;  %s650_s15 = smov 0   ;;  %s652_s16 = smov 0  }
   0x4   :  { %s654_s17 = smov 0   ;;  %s656_s18 = smov 0  }
   0x5 LB: > { %s671_s19 = sadd.s32 4294967295, %s616_s18   ;;  %s435_s20 = sadd.s32 4294967294, %s616_s18   ;;  %s616_s18 = sphi %s656_s18, %s840_s18   ;;  %s612_s17 = sphi %s654_s17, %s839_s17   ;;  %s608_s16 = sphi %s652_s16, %s838_s16   ;;  %s604_s15 = sphi %s650_s15, %s837_s15  }
   0x6   : > { %s675_s21 = sadd.s32 1, %s616_s18   ;;  %s48_s22 = sadd.s32 1, %s612_s17 }
   0x7   : > { %s45_s23 = ssub.s32 %s616_s18, %s675_s21  ;;  %p55_p0 = scmp.ne.s32.totalorder %s612_s17, %s608_s16 }
   0x8   : > { %p46_p1 = scmp.eq.s32.totalorder %s45_s23, 0  ;;  %p56_p2 = scmp.eq.s32.totalorder %s616_s18, 0 }
   0x9   : > { %p61_p3 = scmp.ne.s32.totalorder %s608_s16, %s604_s15  ;;  %p62_p4 = scmp.eq.s32.totalorder %s671_s19, 0 }
   0xa   : > { %s687_s24 = scalar_select %p46_p1, %s612_s17, %s48_s22  }
   0xb   : > { %p689_p5 = por %p56_p2, %p55_p0  ;;  %p693_p6 = por %p62_p4, %p61_p3 }
   0xc   : > { %p127_p7 = scmp.eq.s32.totalorder %s671_s19, 1  ;;  %p133_p8 = scmp.eq.s32.totalorder %s435_s20, 1 }
   0xd   : > { %p468_p10 = scmp.lt.s32.totalorder %s616_s18, 2  ;;  %s162_s29 = sand.u32 1, %s612_s17  }
   0xe   : > { %p700_p11 = por %p127_p7, %p55_p0  ;;  %p704_p12 = por %p133_p8, %p61_p3 }
   0xf   : > { %s450_s30 = sshll.u32 %s616_s18, 8  ;;  %s438_s5 = sshll.u32 %s162_s29, 5 }
  0x10   : > { %s830_s27 = scalar_select %p700_p11, 1, 0 }
  0x11   : > { %s831_s28 = scalar_select %p704_p12, 1, 0 }
  0x12   : > { %s713_s8 = scalar_lea.hbm %s823_s1, %s450_s30  ;;  %s166_s9 = scalar_lea.vmem [#allocation2], %s438_s5 }
  0x13   : > { %s173_s10 = sshll.u32 %s166_s9, 4  ;;  %p717_p13 = pnand %p468_p10, %p689_p5  ;;  %s721_s10 = int_to_ptr.vmem [resolvable:$true] %s173_s10 }
  0x14   : > { %s724_s12 = scalar_lea.sflag [#allocation3], %s162_s29  ;;  %s520_s13 = scalar_lea.hbm %s713_s8, 512 }
  0x15   : > { %p521_p1 = scmp.ne.s32.totalorder %s713_s8, %s520_s13  ;;  %p522_p2 = pneg %p717_p13 }
  0x16   : > { %s525_s22 = scalar_lea.hbm %s823_s1, 1024  ;;  %p526_p5 = scmp.lt.u32.totalorder %s713_s8, %s823_s1 }
  0x17   : > { %p523_p3 = pnand %p522_p2, %p521_p1  ;;  %p527_p7 = scmp.lt.u32.totalorder %s525_s22, %s520_s13 }
  0x18   : > { %p529_p10 = scmp.lt.u32.totalorder %s520_s13, %s713_s8 }
  0x19   : > { %p524_p4 = pneg %p523_p3  ;;  %p528_p8 = por %p527_p7, %p526_p5 }
  0x1b   : > { %p530_p9 = por %p529_p10, %p528_p8 }
  0x1d   : > { %p531_p0 = pnand %p530_p9, %p524_p4 }
  0x1f   : > { %534 = shalt.err (!%p531_p0)
}
  0x20   : > { %s535_s29 = scalar_lea.vmem %s721_s10, 512  ;;  %s618_s30 = smov [#allocation2]  }
  0x21   : > { %p536_p1 = scmp.ne.s32.totalorder %s721_s10, %s535_s29  ;;  %s540_s5 = sshll.u32 %s618_s30, 4  ;;  %s541_s5 = int_to_ptr.vmem [resolvable:$false] %s540_s5 }
  0x22   : > { %s542_s6 = scalar_lea.vmem %s541_s5, 1024  ;;  %p543_p11 = scmp.lt.s32.totalorder %s721_s10, %s541_s5 }
  0x23   : > { %p538_p3 = pnand %p536_p1, %p522_p2  ;;  %p544_p5 = scmp.lt.s32.totalorder %s542_s6, %s535_s29 }
  0x25   : > { %p539_p12 = pneg %p538_p3  ;;  %p545_p7 = por %p544_p5, %p543_p11 }
  0x27   : > { %p546_p8 = pnand %p545_p7, %p539_p12 }
  0x29   : > { %549 = shalt.err (!%p546_p8)
}
  0x2a   : > { %s619_s7 = smov 512   ;;  %s620_s9 = smov 256  }
  0x2b   : > { %s621_s13 = smov 16   ;;  %p181_p9 = scmp.lt.s32.totalorder %s616_s18, 3 }
  0x2c   : > { %463 = dma.hbm_to_vmem [thread:$0]  (!%p717_p13), %s713_s8, 512, %s721_s10, %s724_s12, %s619_s7, %s620_s9, %s621_s13  }
  0x2d   : > { %p833_p0 = scmp.ge.s32.totalorder %s616_s18, 1 }
  0x2f   : > { %p182_p2 = pnand %p833_p0, %p181_p9 }
  0x30   : > { %s756_s14 = sand.u32 (!%p182_p2), 1, %s608_s16  }
  0x31   : > { %185 = sbr.rel (%p182_p2) target bundleno = 343 (0x157), region = 36  ;;  %s442_s20 = sshll.u32 (!%p182_p2), %s756_s14, 5 }
  0x32   : > { %s188_s22 = scalar_lea.sflag (!%p182_p2), [#allocation3], %s756_s14  ;;  %s191_s23 = scalar_lea.vmem (!%p182_p2), [#allocation2], %s442_s20 }
  0x38   : > { %595 = dma.done.wait (%p693_p6), %s188_s22, 512  }
  0x39   : > { %597 = vsyncadd (%p693_p6), %s188_s22, 4294966784  ;;  %v622_v0 = vmov 0.0   ;;  %v623_v1 = vmov 0   ;;  %v220_v2 = vld [vmem:[%s191_s23 + $0x8] sm:$0xff]  ;;  %v222_v3 = vld [vmem:[%s191_s23 + $0x18] sm:$0xff]  ;;  %vm223_vm0 = vcmask 130048  }
  0x3a   : > { %291 = vmatprep.mubr.f32.mxu0 %v622_v0  ;;  %507 = vset.pattern.permute.xlu0 %v623_v1  ;;  %v219_v4 = vld [vmem:[%s191_s23] sm:$0xff]  ;;  %v452_v5 = vpack.c.bf16 %v222_v3, %v220_v2  ;;  %v221_v6 = vld [vmem:[%s191_s23 + $0x10] sm:$0xff]  ;;  %s443_s29 = sshll.u32 %s756_s14, 4  ;;  %s451_s30 = sshll.u32 %s671_s19, 8 }
  0x3b   : > { %v298_v7 = vld [vmem:[%s824_s2] sm:$0xff]  ;;  %v454_v8 = vpack.c.bf16 %v221_v6, %v219_v4  ;;  %s215_s5 = scalar_lea.vmem [#allocation5], %s443_s29  ;;  %s778_s13 = scalar_lea.hbm %s826_s4, %s451_s30 }
  0x3c   : > { %301 = vperm.xlu0 %507, %v298_v7   ;;  %453 = vmatprep.subr.bf16.mxu0 %v452_v5  ;;  %v306_v9 = vld [vmem:[%s825_s3] sm:$0xff]  ;;  %s365_s6 = sshll.u32 %s215_s5, 4  ;;  %s351_s20 = scalar_lea.sflag [#allocation4], %s756_s14  ;;  %s780_s6 = int_to_ptr.vmem [resolvable:$true] %s365_s6 }
  0x3d   : > { %455 = vmatpush1.bf16.msra.mxu0 %v454_v8  ;;  %v218_v10 = vld [vmem:[%s822_s0] sm:$0xff]  ;;  %s550_s19 = scalar_lea.vmem %s780_s6, 256  ;;  %p834_p11 = scmp.ne.s32.totalorder %s830_s27, 0 }
  0x3e   : > { %p551_p6 = scmp.ne.s32.totalorder %s780_s6, %s550_s19  ;;  %s624_s22 = smov [#allocation5]  }
  0x3f   : > { %s554_s23 = sshll.u32 %s624_s22, 4  ;;  %s555_s23 = int_to_ptr.vmem [resolvable:$false] %s554_s23 }
  0x40   : > { %309 = vperm.xlu0 %507, %v306_v9   ;;  %444 = vmatmul.mubr.msk.f32.vlgmr.msra.gmra.mrb[0].mxu0 %vm223_vm0, %v218_v10  ;;  %p552_p12 = pnand %p551_p6, %p834_p11  ;;  %s556_s8 = scalar_lea.vmem %s555_s23, 512 }
  0x41   : > { %p557_p4 = scmp.lt.s32.totalorder %s780_s6, %s555_s23  ;;  %p558_p10 = scmp.lt.s32.totalorder %s556_s8, %s550_s19 }
  0x42   : > { %p553_p13 = pneg %p552_p12 }
  0x43   : > { %p559_p1 = por %p558_p10, %p557_p4 }
  0x45   : > { %p560_p3 = pnand %p559_p1, %p553_p13 }
  0xbb   : > { %v302_v11 = vpop.permute.xlu0 %301 }
  0xbf   : > { %v310_v15 = vpop.permute.xlu0 %309 }
 0x113   : > { %v293_v12 = vpop.f32.mrb[0].mxu0 }
 0x114   : > { %v304_v13 = vmul.f32 %v302_v11, %v293_v12  ;;  %v295_v14 = vpop.f32.mrb[1].mxu0 }
 0x115   : > { %v305_v16 = vmul.f32 %v302_v11, %v295_v14 }
 0x116   : > { %v312_v17 = vadd.f32 %v310_v15, %v304_v13 }
 0x117   : > { %v313_v18 = vadd.f32 %v310_v15, %v305_v16 }
 0x118   : > { %v316_v19 = vand.u32 2147483647, %v312_v17  ;;  %v314_v39 = vmax.f32 %v312_v17, 0.0 }
 0x119   : > { %v317_v20 = vand.u32 2147483647, %v313_v18  ;;  %v315_v43 = vmax.f32 %v313_v18, 0.0 }
 0x11a   : > { %v318_v21 = vsub.f32 0.0, %v316_v19 }
 0x11b   : > { %v319_v22 = vsub.f32 0.0, %v317_v20 }
 0x11c   : > { %v320_v23 = vmul.f32 1.442695, %v318_v21 }
 0x11d   : > { %v322_v24 = vmul.f32 1.442695, %v319_v22 }
 0x11e   : > { %508 = vpow2.f32 %v320_v23 }
 0x11f   : > { %510 = vpow2.f32 %v322_v24 }
 0x128   : > { %v509_v25 = vpop.eup %508 }
 0x129   : > { %v511_v26 = vpop.eup %510  ;;  %v324_v27 = vadd.f32 1.0, %v509_v25  ;;  %v327_v29 = vmul.f32 -0.5, %v509_v25  ;;  %v330_v32 = vand.u32 2147483647, %v509_v25 }
 0x12a   : > { %v333_v28 = vadd.f32 1.0, %v511_v26  ;;  %v336_v30 = vmul.f32 -0.5, %v511_v26  ;;  %v339_v34 = vand.u32 2147483647, %v511_v26 }
 0x12b   : > { %512 = vlog2.f32 %v324_v27  ;;  %v328_v31 = vadd.f32 1.0, %v327_v29  ;;  %vm331_vm1 = vcmp.lt.f32.partialorder %v330_v32, 0.0004427343 }
 0x12c   : > { %514 = vlog2.f32 %v333_v28  ;;  %v337_v33 = vadd.f32 1.0, %v336_v30  ;;  %vm340_vm2 = vcmp.lt.f32.partialorder %v339_v34, 0.0004427343 }
 0x12d   : > { %v329_v38 = vmul.f32 %v509_v25, %v328_v31 }
 0x12e   : > { %v338_v41 = vmul.f32 %v511_v26, %v337_v33 }
 0x135   : > { %v513_v35 = vpop.eup %512 }
 0x136   : > { %v515_v36 = vpop.eup %514  ;;  %v326_v37 = vmul.f32 0.6931472, %v513_v35 }
 0x137   : > { %v335_v40 = vmul.f32 0.6931472, %v515_v36 }
 0x138   : > { %v332_v42 = vsel %vm331_vm1, %v329_v38, %v326_v37 }
 0x139   : > { %v342_v44 = vadd.f32 %v332_v42, %v314_v39  ;;  %v341_v45 = vsel %vm340_vm2, %v338_v41, %v335_v40 }
 0x13a   : > { %v343_v46 = vadd.f32 %v341_v45, %v315_v43 }
 0x13b   : > { %516 = vtanh.f32 %v342_v44 }
 0x13c   : > { %518 = vtanh.f32 %v343_v46 }
 0x145   : > { %v517_v47 = vpop.eup %516 }
 0x146   : > { %v519_v48 = vpop.eup %518  ;;  %v346_v49 = vmul.f32 %v517_v47, %v312_v17 }
 0x147   : > { %v347_v50 = vmul.f32 %v519_v48, %v313_v18 }
 0x148   : > { %348 = vst [vmem:[%s215_s5] sm:$0xff] %v346_v49 }
 0x149   : > { %349 = vst [vmem:[%s215_s5 + $0x8] sm:$0xff] %v347_v50 }
 0x14a   : > { %563 = shalt.err (!%p560_p3)
}
 0x14b   : > { %s564_s14 = scalar_lea.hbm %s778_s13, 256  ;;  %s568_s12 = scalar_lea.hbm %s826_s4, 512 }
 0x14c   : > { %p565_p5 = scmp.ne.s32.totalorder %s778_s13, %s564_s14  ;;  %p569_p9 = scmp.lt.u32.totalorder %s778_s13, %s826_s4 }
 0x14d   : > { %p570_p0 = scmp.lt.u32.totalorder %s568_s12, %s564_s14  ;;  %p572_p6 = scmp.lt.u32.totalorder %s564_s14, %s778_s13 }
 0x14e   : > { %p566_p7 = pnand %p565_p5, %p834_p11 }
 0x14f   : > { %p571_p2 = por %p570_p0, %p569_p9 }
 0x150   : > { %p567_p8 = pneg %p566_p7 }
 0x151   : > { %p573_p12 = por %p572_p6, %p571_p2 }
 0x153   : > { %p574_p13 = pnand %p573_p12, %p567_p8 }
 0x155   : > { %577 = shalt.err (!%p574_p13)
}
 0x156   : > { %458 = dma.vmem_to_hbm [thread:$0]  (%p834_p11), %s780_s6, 256, %s778_s13, %s351_s20  }
 0x157 PF: > { %s377_s29 = sand.u32 1, %s604_s15   ;;  %p835_p4 = scmp.ne.s32.totalorder %s831_s28, 0 }
 0x158   : > { %p836_p10 = scmp.ge.s32.totalorder %s616_s18, 2  ;;  %s378_s30 = scalar_lea.sflag [#allocation4], %s377_s29 }
 0x15a   : > { %p465_p1 = pnand %p836_p10, %p835_p4 }
 0x15c   : > { %599 = dma.done.wait (!%p465_p1), %s378_s30, 256  }
 0x15d   : > { %601 = vsyncadd (!%p465_p1), %s378_s30, 4294967040  ;;  %p17_p3 = scmp.ge.s32.totalorder %s675_s21, 4   ;;  %s837_s15 = smov %s608_s16 }
 0x15e   : > { %s838_s16 = smov %s612_s17  ;;  %s839_s17 = smov %s687_s24 }
 0x15f   : > { %s840_s18 = smov %s675_s21  ;;  %19 = sbr.rel (!%p17_p3) target bundleno = 5 (0x5), region = 81 }
 0x166   :  { %383 = vsyncpa [#allocation3], 1 }
 0x167   :  { %385 = vsyncpa [#allocation3 + $0x1], 1 }
 0x168   :  { %386 = vsyncpa [#allocation4], 1 }
 0x169   :  { %388 = vsyncpa [#allocation4 + $0x1], 1 }

</bundles_post_ra>
